<compile_context>
chip_gen: v6e
topology: v6e:2x2x1
jax: 0.10.0
libtpu: 0.0.40
codegen_flags: <defaults>
</compile_context>

<pallas_src>
import functools

import jax
import jax.numpy as jnp
from jax.experimental import pallas as pl
from jax.experimental.pallas import tpu as pltpu

_SUBLANE = 8
_PAD = 256          # v6e/v7x MXU is 2x256x256; 128 would leave half of it idle.
_MAX_TB = 2048      # upper bound on the batch tile (diminishing returns past ~1K)


def _round_up(x, m):
    return (x + m - 1) // m * m


def _vmem_capacity_bytes():
    """Per-TensorCore VMEM capacity; conservative (v7x = 64 MiB) fallback."""
    try:
        return int(pltpu.get_tpu_info().vmem_capacity_bytes)
    except Exception:  # trace-time query unavailable -> assume smallest target
        return 64 << 20


def mlp_kernel(x_ref, w1_ref, b1_ref, w2_ref, b2_ref, o_ref):
    # First layer: bf16 operands on the MXU, f32 accumulation.
    x = x_ref[...]
    if x.dtype != w1_ref.dtype:
        x = x.astype(w1_ref.dtype)
    h = jnp.dot(x, w1_ref[...], preferred_element_type=jnp.float32)
    # Bias add + ReLU in f32 on the VPU (avoids bf16 elementwise emulation on v5e).
    h = jnp.maximum(h + b1_ref[...], 0.0)
    # Second layer: cast activation to bf16 for the MXU, accumulate in f32.
    o = jnp.dot(h.astype(w2_ref.dtype), w2_ref[...],
                preferred_element_type=jnp.float32)
    o_ref[...] = (o + b2_ref[...]).astype(o_ref.dtype)


def prepare_params(w1, b1, w2, b2, compute_dtype=jnp.bfloat16, pad_multiple=_PAD):
    """One-time parameter preparation (call at init, NOT per forward pass).

    Takes PyTorch nn.Linear layout (weight [out, in], bias [out]) and returns:
      w1_t [n_input, H_pad]  (compute_dtype, zero-padded columns)
      b1_p [1, H_pad]        (f32, zero-padded)
      w2_t [H_pad, O_pad]    (compute_dtype, zero-padded rows/cols)
      b2_p [1, O_pad]        (f32, zero-padded)
    Zero padding keeps the math exact: padded hidden units are relu(0)=0 and
    padded output lanes are sliced off (or ignored) by the consumer.

    # TODO(synk): optional int8 weight path for v5e/v6e (int MXU) and fp8 for
    # v7x would halve weight footprint; left out to keep one portable dtype.
    """
    n_hidden, n_input = w1.shape
    n_output = w2.shape[0]
    h_pad = _round_up(n_hidden, pad_multiple)
    o_pad = _round_up(n_output, pad_multiple)

    w1_t = jnp.zeros((n_input, h_pad), compute_dtype)
    w1_t = w1_t.at[:, :n_hidden].set(w1.T.astype(compute_dtype))
    b1_p = jnp.zeros((1, h_pad), jnp.float32)
    b1_p = b1_p.at[:, :n_hidden].set(b1.astype(jnp.float32))
    w2_t = jnp.zeros((h_pad, o_pad), compute_dtype)
    w2_t = w2_t.at[:n_hidden, :n_output].set(w2.T.astype(compute_dtype))
    b2_p = jnp.zeros((1, o_pad), jnp.float32)
    b2_p = b2_p.at[:, :n_output].set(b2.astype(jnp.float32))
    return w1_t, b1_p, w2_t, b2_p


@functools.partial(jax.jit,
                   static_argnames=("n_output", "out_dtype", "slice_output"))
def net_forward(x, w1_t, b1_p, w2_t, b2_p, *, n_output,
                out_dtype=jnp.float32, slice_output=True):
    """x: [B, n_input] (bf16 preferred); params already in kernel layout."""
    B, n_input = x.shape
    h_pad = w1_t.shape[1]
    o_pad = w2_t.shape[1]

    x_bytes = jnp.dtype(x.dtype).itemsize
    out_bytes = jnp.dtype(out_dtype).itemsize
    w_bytes = jnp.dtype(w1_t.dtype).itemsize

    # --- Generation-aware VMEM budget -------------------------------------
    vmem_cap = _vmem_capacity_bytes()                    # 64 MiB (v7x) / 128 MiB
    budget = min(vmem_cap - (8 << 20), 100 << 20)        # ~56 MiB v7x, ~100 MiB v5e/v6e

    # Resident operands are single-buffered (pl.Buffered(1)): one copy each.
    resident = (w1_t.size * w_bytes + w2_t.size * w_bytes
                + (b1_p.size + b2_p.size) * 4)
    # Per-batch-row bytes: streamed tiles (double-buffered) + in-kernel temps.
    per_row = (2 * n_input * x_bytes                     # x tile, 2 buffers
               + 2 * o_pad * out_bytes                   # out tile, 2 buffers
               + h_pad * 4                               # f32 hidden activation
               + h_pad * w_bytes                         # bf16 cast of hidden
               + (n_input * w_bytes if x.dtype != w1_t.dtype else 0))
    headroom = 4 << 20                                   # compiler-internal scratch
    avail = budget - resident - headroom
    # TODO(synk): if `avail` <= 0 (weights no longer fit resident, mainly on
    # v7x's 64 MiB VMEM), add a second grid axis over h_pad with an f32
    # accumulator scratch ("arbitrary" semantics) instead of resident weights.
    max_tb = max(avail // per_row, _SUBLANE)

    if B <= _SUBLANE:
        TB = B                                           # full (tiny) batch
    else:
        TB = int(min(max_tb, _MAX_TB, B))
        TB = max((TB // _SUBLANE) * _SUBLANE, _SUBLANE)
        # v7x megacore: with a big batch make sure there are >= 2 tiles so the
        # "parallel" axis can shard across both TensorCores.
        if B >= 1024 and pl.cdiv(B, TB) < 2:
            TB = max(_round_up(pl.cdiv(B, 2), _SUBLANE), _SUBLANE)

    grid = (pl.cdiv(B, TB),)

    vmem_est = resident + TB * per_row + headroom        # counts temps; <= budget
    vmem_limit = int(min(max(vmem_est, 16 << 20), budget))

    resident_kw = dict(pipeline_mode=pl.Buffered(1))     # DMA'd once, no double-buffer

    out = pl.pallas_call(
        mlp_kernel,
        out_shape=jax.ShapeDtypeStruct((B, o_pad), out_dtype),
        grid_spec=pl.GridSpec(
            grid=grid,
            in_specs=[
                # x: streamed per batch tile (default double-buffering).
                # TODO(synk): sweep pipeline_mode=pl.Buffered(3) here if
                # profiling shows exposed DMA on the x stream at small h_pad.
                pl.BlockSpec((TB, n_input), lambda i: (i, 0)),
                # Weights / biases: resident across all batch tiles.
                pl.BlockSpec((n_input, h_pad), lambda i: (0, 0), **resident_kw),
                pl.BlockSpec((1, h_pad), lambda i: (0, 0), **resident_kw),
                pl.BlockSpec((h_pad, o_pad), lambda i: (0, 0), **resident_kw),
                pl.BlockSpec((1, o_pad), lambda i: (0, 0), **resident_kw),
            ],
            out_specs=pl.BlockSpec((TB, o_pad), lambda i: (i, 0)),  # lane-dense slab
        ),
        compiler_params=pltpu.CompilerParams(
            dimension_semantics=("parallel",),
            vmem_limit_bytes=vmem_limit),
    )(x, w1_t, b1_p, w2_t, b2_p)

    if slice_output:
        # Layout plumbing only: drop zero-padded output lanes.  For a fused
        # pipeline, call with slice_output=False and let the consumer ignore
        # (or slice) the padded lanes to avoid this extra HBM pass.
        return out[:, :n_output]
    return out


if __name__ == "__main__":
    # Shapes implied by Net(n_input, n_hidden, n_output): 2-D input [batch, n_input].
    B, n_input, n_hidden, n_output = 8, 16, 32, 4

    key = jax.random.PRNGKey(0)
    kx, k1, k2, k3, k4 = jax.random.split(key, 5)

    x_f32 = jax.random.normal(kx, (B, n_input), dtype=jnp.float32)
    # PyTorch-layout parameters (nn.Linear: weight [out, in], bias [out]).
    w1 = jax.random.normal(k1, (n_hidden, n_input), dtype=jnp.float32) * 0.1
    b1 = jax.random.normal(k2, (n_hidden,), dtype=jnp.float32) * 0.1
    w2 = jax.random.normal(k3, (n_output, n_hidden), dtype=jnp.float32) * 0.1
    b2 = jax.random.normal(k4, (n_output,), dtype=jnp.float32) * 0.1

    # One-time parameter prep (hoisted out of the forward path); producer hands
    # the kernel bf16 activations (halves the dominant HBM read).
    w1_t, b1_p, w2_t, b2_p = prepare_params(w1, b1, w2, b2)
    x = x_f32.astype(jnp.bfloat16)

    out = net_forward(x, w1_t, b1_p, w2_t, b2_p, n_output=n_output)
    out = jax.block_until_ready(out)
    assert out.shape == (B, n_output)

    # Reference with matched numerics (bf16 matmul operands, f32 accumulation,
    # f32 bias/ReLU), plus a loose sanity check against the pure-f32 math.
    w1b = w1.astype(jnp.bfloat16)
    w2b = w2.astype(jnp.bfloat16)
    h_ref = jnp.maximum(
        jnp.dot(x, w1b.T, preferred_element_type=jnp.float32) + b1, 0.0)
    ref_bf16 = jnp.dot(h_ref.astype(jnp.bfloat16), w2b.T,
                       preferred_element_type=jnp.float32) + b2
    ref_f32 = jnp.maximum(x_f32 @ w1.T + b1, 0.0) @ w2.T + b2

    assert jnp.allclose(out, ref_bf16, atol=2e-3, rtol=2e-3)
    assert jnp.allclose(out, ref_f32, atol=5e-2, rtol=5e-2)

    print("KERNEL_OK")
</pallas_src>

<mosaic_0001>
module attributes {stable_mosaic.version = 11 : i64} {
  func.func @mlp_kernel(%arg0: i32, %arg1: memref<8x16xbf16, #tpu.memory_space<vmem>>, %arg2: memref<16x256xbf16, #tpu.memory_space<vmem>>, %arg3: memref<1x256xf32, #tpu.memory_space<vmem>>, %arg4: memref<256x256xbf16, #tpu.memory_space<vmem>>, %arg5: memref<1x256xf32, #tpu.memory_space<vmem>>, %arg6: memref<8x256xf32, #tpu.memory_space<vmem>>) attributes {dimension_semantics = [#tpu.dimension_semantics<parallel>], iteration_bounds = array<i64: 1>, scalar_prefetch = 0 : i64, scratch_operands = 0 : i64, tpu.core_type = #tpu.core_type<tc>, window_params = [{transform_indices = @transform_0, window_bounds = array<i64: 8, 16>}, {pipeline_mode = #tpu.pipeline_mode<synchronous>, transform_indices = @transform_1, window_bounds = array<i64: 16, 256>}, {pipeline_mode = #tpu.pipeline_mode<synchronous>, transform_indices = @transform_2, window_bounds = array<i64: 1, 256>}, {pipeline_mode = #tpu.pipeline_mode<synchronous>, transform_indices = @transform_3, window_bounds = array<i64: 256, 256>}, {pipeline_mode = #tpu.pipeline_mode<synchronous>, transform_indices = @transform_4, window_bounds = array<i64: 1, 256>}, {transform_indices = @transform_5, window_bounds = array<i64: 8, 256>}]} {
    %c0 = arith.constant 0 : index
    %c0_0 = arith.constant 0 : index
    %0 = vector.load %arg1[%c0, %c0_0] : memref<8x16xbf16, #tpu.memory_space<vmem>>, vector<8x16xbf16>
    %c0_1 = arith.constant 0 : index
    %c0_2 = arith.constant 0 : index
    %1 = vector.load %arg2[%c0_1, %c0_2] : memref<16x256xbf16, #tpu.memory_space<vmem>>, vector<16x256xbf16>
    %cst = arith.constant dense<0.000000e+00> : vector<8x256xf32>
    %2 = tpu.matmul %0, %1, %cst {dimension_numbers = #tpu.dot_dimension_numbers<[1], [0], [0], [1], [0, 0, 1, 1], [], []>} : vector<8x16xbf16>, vector<16x256xbf16>, vector<8x256xf32> -> vector<8x256xf32>
    %c0_3 = arith.constant 0 : index
    %c0_4 = arith.constant 0 : index
    %3 = vector.load %arg3[%c0_3, %c0_4] : memref<1x256xf32, #tpu.memory_space<vmem>>, vector<1x256xf32>
    %4 = vector.broadcast %3 : vector<1x256xf32> to vector<8x256xf32>
    %5 = arith.addf %2, %4 : vector<8x256xf32>
    %cst_5 = arith.constant 0.000000e+00 : f32
    %6 = vector.broadcast %cst_5 : f32 to vector<8x256xf32>
    %7 = arith.maximumf %5, %6 : vector<8x256xf32>
    %8 = arith.truncf %7 : vector<8x256xf32> to vector<8x256xbf16>
    %c0_6 = arith.constant 0 : index
    %c0_7 = arith.constant 0 : index
    %9 = vector.load %arg4[%c0_6, %c0_7] : memref<256x256xbf16, #tpu.memory_space<vmem>>, vector<256x256xbf16>
    %cst_8 = arith.constant dense<0.000000e+00> : vector<8x256xf32>
    %10 = tpu.matmul %8, %9, %cst_8 {dimension_numbers = #tpu.dot_dimension_numbers<[1], [0], [0], [1], [0, 0, 1, 1], [], []>} : vector<8x256xbf16>, vector<256x256xbf16>, vector<8x256xf32> -> vector<8x256xf32>
    %c0_9 = arith.constant 0 : index
    %c0_10 = arith.constant 0 : index
    %11 = vector.load %arg5[%c0_9, %c0_10] : memref<1x256xf32, #tpu.memory_space<vmem>>, vector<1x256xf32>
    %12 = vector.broadcast %11 : vector<1x256xf32> to vector<8x256xf32>
    %13 = arith.addf %10, %12 : vector<8x256xf32>
    %c0_11 = arith.constant 0 : index
    %c0_12 = arith.constant 0 : index
    %14 = vector.load %arg6[%c0_11, %c0_12] : memref<8x256xf32, #tpu.memory_space<vmem>>, vector<8x256xf32>
    tpu.vector_store %arg6[%c0_11, %c0_12], %13 {strides = array<i32>} : memref<8x256xf32, #tpu.memory_space<vmem>>, vector<8x256xf32>,
    return
  }
  func.func @transform_0(%arg0: i32) -> (i32, i32) {
    %c0_i32 = arith.constant 0 : i32
    %c0_i32_0 = arith.constant 0 : i32
    return %arg0, %c0_i32 : i32, i32
  }
  func.func @transform_1(%arg0: i32) -> (i32, i32) {
    %c0_i32 = arith.constant 0 : i32
    %c0_i32_0 = arith.constant 0 : i32
    %c0_i32_1 = arith.constant 0 : i32
    return %c0_i32, %c0_i32_0 : i32, i32
  }
  func.func @transform_2(%arg0: i32) -> (i32, i32) {
    %c0_i32 = arith.constant 0 : i32
    %c0_i32_0 = arith.constant 0 : i32
    %c0_i32_1 = arith.constant 0 : i32
    return %c0_i32, %c0_i32_0 : i32, i32
  }
  func.func @transform_3(%arg0: i32) -> (i32, i32) {
    %c0_i32 = arith.constant 0 : i32
    %c0_i32_0 = arith.constant 0 : i32
    %c0_i32_1 = arith.constant 0 : i32
    return %c0_i32, %c0_i32_0 : i32, i32
  }
  func.func @transform_4(%arg0: i32) -> (i32, i32) {
    %c0_i32 = arith.constant 0 : i32
    %c0_i32_0 = arith.constant 0 : i32
    %c0_i32_1 = arith.constant 0 : i32
    return %c0_i32, %c0_i32_0 : i32, i32
  }
  func.func @transform_5(%arg0: i32) -> (i32, i32) {
    %c0_i32 = arith.constant 0 : i32
    %c0_i32_0 = arith.constant 0 : i32
    return %arg0, %c0_i32 : i32, i32
  }
}

</mosaic_0001>

<bundles_post_ra>
// kernel: net_forward.1
= control target key start
LH: loop header
LB: loop body
LE: loop exit
PB: predicated region body
PF: predicated region fallthrough
CT: control target
= control target key end

     0   :  { %10 = vsyncpa [#allocation3], 0  ;;  %s600_s0 = inlined_call_operand.hbm [shape: bf16[8,16], index: 0, kind: input, shape index: {}]   ;;  %s601_s1 = inlined_call_operand.hbm [shape: bf16[16,256], index: 1, kind: input, shape index: {}]   ;;  %s602_s2 = inlined_call_operand.vmem [shape: f32[1,256], index: 2, kind: input, shape index: {}]   ;;  %s603_s3 = inlined_call_operand.hbm [shape: bf16[256,256], index: 3, kind: input, shape index: {}]   ;;  %s604_s4 = inlined_call_operand.vmem [shape: f32[1,256], index: 4, kind: input, shape index: {}]   ;;  %s605_s5 = inlined_call_operand.vmem [shape: f32[8,256], index: 5, kind: output, shape index: {}]  }
   0x1   :  { %11 = vsyncpa [#allocation5], 0  ;;  %s543_s18 = smov [#allocation4]  }
   0x2   :  { %s27_s19 = sshll.u32 %s543_s18, 4  ;;  %s28_s19 = int_to_ptr.vmem [resolvable:$true] %s27_s19 }
   0x3   :  { %s487_s20 = scalar_lea.vmem %s28_s19, 256  ;;  %p492_p1 = scmp.lt.s32.totalorder %s28_s19, %s28_s19 }
   0x4   :  { %p488_p0 = scmp.ne.s32.totalorder %s28_s19, %s487_s20  ;;  %p493_p2 = scmp.lt.s32.totalorder %s487_s20, %s487_s20 }
   0x6   :  { %p494_p3 = por %p493_p2, %p492_p1 }
   0x8   :  { %p495_p4 = pnand %p494_p3, %p488_p0 }
   0xa   :  { %498 = shalt.err (!%p495_p4)
}
   0xb   :  { %s544_s21 = smov 128   ;;  %s545_s22 = smov 8  }
   0xc   :  { %33 = dma.hbm_to_vmem [thread:$0]  %s601_s1, 256, %s28_s19, [#allocation5], %s544_s21, %s544_s21, %s545_s22  }
   0xd   :  { %s546_s25 = smov [#allocation2]   ;;  %s547_s27 = smov [#allocation6]  }
   0xe   :  { %s18_s26 = sshll.u32 %s546_s25, 4  ;;  %s41_s28 = sshll.u32 %s547_s27, 4  ;;  %s19_s26 = int_to_ptr.vmem [resolvable:$true] %s18_s26  ;;  %s42_s28 = int_to_ptr.vmem [resolvable:$true] %s41_s28 }
   0xf   :  { %s507_s29 = scalar_lea.vmem %s19_s26, 64  ;;  %p512_p6 = scmp.lt.s32.totalorder %s19_s26, %s19_s26 }
  0x10   :  { %p508_p5 = scmp.ne.s32.totalorder %s19_s26, %s507_s29  ;;  %p513_p7 = scmp.lt.s32.totalorder %s507_s29, %s507_s29 }
  0x12   :  { %p514_p8 = por %p513_p7, %p512_p6 }
  0x14   :  { %p515_p9 = pnand %p514_p8, %p508_p5 }
  0x16   :  { %518 = shalt.err (!%p515_p9)
}
  0x17   :  { %21 = dma.hbm_to_vmem [thread:$0]  %s600_s0, 64, %s19_s26, [#allocation3]  }
  0x18   :  { %s527_s7 = scalar_lea.vmem %s42_s28, 4096  ;;  %p532_p11 = scmp.lt.s32.totalorder %s42_s28, %s42_s28 }
  0x19   :  { %p528_p10 = scmp.ne.s32.totalorder %s42_s28, %s527_s7  ;;  %p533_p12 = scmp.lt.s32.totalorder %s527_s7, %s527_s7 }
  0x1b   :  { %p534_p13 = por %p533_p12, %p532_p11 }
  0x1d   :  { %p535_p0 = pnand %p534_p13, %p528_p10 }
  0x1f   :  { %538 = shalt.err (!%p535_p0)
}
  0x20   :  { %47 = dma.hbm_to_vmem [thread:$0]  %s603_s3, 4096, %s42_s28, [#allocation5], %s544_s21, %s544_s21, %s545_s22  }
  0x21   :  { %539 = dma.done.wait [#allocation3], 64  }
  0x22   :  { %540 = vsyncadd [#allocation3], 4294967232 }
  0x23   :  { %541 = dma.done.wait [#allocation5], 4352  }
  0x24   :  { %542 = vsyncadd [#allocation5], 4294962944  ;;  %v548_v0 = vmov 0   ;;  %v428_v1 = vld [vmem:[#allocation4 + $0x4] ss:$8 sps:$4 sm:$0xff]   ;;  %vm85_vm0 = vcmask 130048   ;;  %v65_v36 = vlaneseq }
  0x25   :  { %121 = vmatprep.mubr.bf16.mxu0 %v548_v0  ;;  %v430_v2 = vld [vmem:[#allocation4] ss:$8 sps:$4 sm:$0xff]   ;;  %v60_v3 = vld [vmem:[#allocation2] sm:$0xf]  ;;  %103 = vmatprep.subr.bf16.mxu0 %v428_v1  ;;  %v431_v4 = vld [vmem:[#allocation6 + $0x74] ss:$8 sps:$4 sm:$0xff]  }
  0x26   :  { %v433_v5 = vld [vmem:[#allocation6 + $0x70] ss:$8 sps:$4 sm:$0xff]   ;;  %104 = vmatpush1.bf16.msra.mxu0 %v430_v2  ;;  %v434_v6 = vld [vmem:[#allocation6 + $0x64] ss:$8 sps:$4 sm:$0xff]   ;;  %338 = vmatprep.subr.bf16.mxu1 %v431_v4  ;;  %v436_v7 = vld [vmem:[#allocation6 + $0x60] ss:$8 sps:$4 sm:$0xff]  }
  0x27   :  { %339 = vmatpush1.bf16.msra.mxu1 %v433_v5  ;;  %v437_v8 = vld [vmem:[#allocation6 + $0x54] ss:$8 sps:$4 sm:$0xff]   ;;  %v439_v9 = vld [vmem:[#allocation6 + $0x50] ss:$8 sps:$4 sm:$0xff]   ;;  %v440_v10 = vld [vmem:[#allocation6 + $0x44] ss:$8 sps:$4 sm:$0xff]  }
  0x28   :  { %340 = vmatprep.subr.bf16.mxu1 %v434_v6  ;;  %v442_v11 = vld [vmem:[#allocation6 + $0x40] ss:$8 sps:$4 sm:$0xff]   ;;  %v443_v12 = vld [vmem:[#allocation6 + $0x34] ss:$8 sps:$4 sm:$0xff]   ;;  %v445_v13 = vld [vmem:[#allocation6 + $0x30] ss:$8 sps:$4 sm:$0xff]  }
  0x29   :  { %389 = vmatmul.mubr.msk.bf16.vlgmr.msra.gmra.mxu0 %vm85_vm0, %v60_v3  ;;  %v446_v14 = vld [vmem:[#allocation6 + $0x24] ss:$8 sps:$4 sm:$0xff]   ;;  %v448_v15 = vld [vmem:[#allocation6 + $0x20] ss:$8 sps:$4 sm:$0xff]   ;;  %v449_v16 = vld [vmem:[#allocation6 + $0x14] ss:$8 sps:$4 sm:$0xff]  }
  0x2a   :  { %v451_v17 = vld [vmem:[#allocation6 + $0x10] ss:$8 sps:$4 sm:$0xff]   ;;  %v452_v18 = vld [vmem:[#allocation6 + $0x4] ss:$8 sps:$4 sm:$0xff]   ;;  %v454_v19 = vld [vmem:[#allocation6] ss:$8 sps:$4 sm:$0xff]  }
  0x2b   :  { %341 = vmatpush1.bf16.msra.mxu1 %v436_v7  ;;  %v455_v20 = vld [vmem:[#allocation6 + $0xf4] ss:$8 sps:$4 sm:$0xff]   ;;  %v457_v21 = vld [vmem:[#allocation6 + $0xf0] ss:$8 sps:$4 sm:$0xff]   ;;  %v458_v22 = vld [vmem:[#allocation6 + $0xe4] ss:$8 sps:$4 sm:$0xff]  }
  0x2c   :  { %342 = vmatprep.subr.bf16.mxu1 %v437_v8  ;;  %v460_v23 = vld [vmem:[#allocation6 + $0xe0] ss:$8 sps:$4 sm:$0xff]   ;;  %v461_v24 = vld [vmem:[#allocation6 + $0xd4] ss:$8 sps:$4 sm:$0xff]   ;;  %v463_v25 = vld [vmem:[#allocation6 + $0xd0] ss:$8 sps:$4 sm:$0xff]  }
  0x2d   :  { %v464_v26 = vld [vmem:[#allocation6 + $0xc4] ss:$8 sps:$4 sm:$0xff]   ;;  %v466_v27 = vld [vmem:[#allocation6 + $0xc0] ss:$8 sps:$4 sm:$0xff]   ;;  %v467_v28 = vld [vmem:[#allocation6 + $0xb4] ss:$8 sps:$4 sm:$0xff]  }
  0x2e   :  { %v469_v29 = vld [vmem:[#allocation6 + $0xb0] ss:$8 sps:$4 sm:$0xff]   ;;  %v470_v30 = vld [vmem:[#allocation6 + $0xa4] ss:$8 sps:$4 sm:$0xff]   ;;  %v472_v31 = vld [vmem:[#allocation6 + $0xa0] ss:$8 sps:$4 sm:$0xff]  }
  0x2f   :  { %343 = vmatpush1.bf16.msra.mxu1 %v439_v9  ;;  %v473_v32 = vld [vmem:[#allocation6 + $0x94] ss:$8 sps:$4 sm:$0xff]   ;;  %v475_v33 = vld [vmem:[#allocation6 + $0x90] ss:$8 sps:$4 sm:$0xff]   ;;  %v476_v34 = vld [vmem:[#allocation6 + $0x84] ss:$8 sps:$4 sm:$0xff]  }
  0x30   :  { %344 = vmatprep.subr.bf16.mxu1 %v440_v10  ;;  %v478_v35 = vld [vmem:[#allocation6 + $0x80] ss:$8 sps:$4 sm:$0xff]   ;;  %v66_v37 = vshrl.u32 %v65_v36, 7  ;;  %v63_v39 = vld [vmem:[%s602_s2] sm:$0x3] }
  0x31   :  { %v166_v53 = vld [vmem:[%s604_s4] sm:$0x3] }
  0x32   :  { %v67_v38 = vsub.s32 0, %v66_v37  ;;  %v71_v40 = vsub.s32 1, %v66_v37 }
  0x33   :  { %345 = vmatpush1.bf16.msra.mxu1 %v442_v11 }
  0x34   :  { %346 = vmatprep.subr.bf16.mxu1 %v443_v12  ;;  %v68_v41 = vrot.slane %v63_v39, %v67_v38  ;;  %v72_v42 = vrot.slane %v63_v39, %v71_v40  ;;  %v171_v54 = vrot.slane %v166_v53, %v67_v38  ;;  %v175_v55 = vrot.slane %v166_v53, %v71_v40 }
  0x37   :  { %347 = vmatpush1.bf16.msra.mxu1 %v445_v13 }
  0x38   :  { %348 = vmatprep.subr.bf16.mxu1 %v446_v14 }
  0x3b   :  { %349 = vmatpush1.bf16.msra.mxu1 %v448_v15 }
  0x3c   :  { %350 = vmatprep.subr.bf16.mxu1 %v449_v16 }
  0x3f   :  { %351 = vmatpush1.bf16.msra.mxu1 %v451_v17 }
  0x40   :  { %352 = vmatprep.subr.bf16.mxu1 %v452_v18 }
  0x43   :  { %353 = vmatpush1.bf16.msra.mxu1 %v454_v19 }
  0x44   :  { %354 = vmatprep.subr.bf16.mxu1 %v455_v20 }
  0x47   :  { %355 = vmatpush2.bf16.msra.mxu1 %v457_v21 }
  0x48   :  { %356 = vmatprep.subr.bf16.mxu1 %v458_v22 }
  0x4b   :  { %357 = vmatpush2.bf16.msra.mxu1 %v460_v23 }
  0x4c   :  { %358 = vmatprep.subr.bf16.mxu1 %v461_v24 }
  0x4f   :  { %359 = vmatpush2.bf16.msra.mxu1 %v463_v25 }
  0x50   :  { %360 = vmatprep.subr.bf16.mxu1 %v464_v26 }
  0x53   :  { %361 = vmatpush2.bf16.msra.mxu1 %v466_v27 }
  0x54   :  { %362 = vmatprep.subr.bf16.mxu1 %v467_v28 }
  0x57   :  { %363 = vmatpush2.bf16.msra.mxu1 %v469_v29 }
  0x58   :  { %364 = vmatprep.subr.bf16.mxu1 %v470_v30 }
  0x5b   :  { %365 = vmatpush2.bf16.msra.mxu1 %v472_v31 }
  0x5c   :  { %366 = vmatprep.subr.bf16.mxu1 %v473_v32 }
  0x5f   :  { %367 = vmatpush2.bf16.msra.mxu1 %v475_v33 }
  0x60   :  { %368 = vmatprep.subr.bf16.mxu1 %v476_v34 }
  0x63   :  { %369 = vmatpush2.bf16.msra.mxu1 %v478_v35 }
  0xe9   :  { %v123_v43 = vpop.f32.mrf.mxu0 }
  0xea   :  { %v124_v44 = vadd.f32 %v123_v43, %v68_v41 }
  0xeb   :  { %v125_v45 = vpop.f32.mrf.mxu0 }
  0xec   :  { %v126_v46 = vadd.f32 %v125_v45, %v72_v42  ;;  %v130_v47 = vmax.f32 %v124_v44, 0.0 }
  0xed   :  { %v127_v48 = vpop.f32.mrf.mxu0 }
  0xee   :  { %v131_v49 = vmax.f32 %v126_v46, 0.0  ;;  %v132_v52 = vpack.c.bf16 %v130_v47, %v130_v47 }
  0xef   :  { %v128_v50 = vpop.f32.mrf.mxu0 }
  0xf0   :  { %v133_v51 = vpack.c.bf16 %v131_v49, %v131_v49 }
  0xf2   :  { %370 = vmatprep.mubr.bf16.mxu1 %v133_v51 }
  0xf3   :  { %371 = vmatmul.mubr.bf16.vlgmr.msra.gmra.mxu1 %v132_v52 }
 0x1b3   :  { %v372_v56 = vpop.f32.mrf.mxu1 }
 0x1b4   :  { %v373_v57 = vadd.f32 %v372_v56, %v171_v54 }
 0x1b5   :  { %v374_v58 = vpop.f32.mrf.mxu1 }
 0x1b6   :  { %379 = vst [vmem:[%s605_s5] sm:$0xff] %v373_v57  ;;  %v375_v59 = vadd.f32 %v374_v58, %v175_v55 }
 0x1b7   :  { %v376_v60 = vpop.f32.mrf.mxu1 }
 0x1b8   :  { %380 = vst [vmem:[%s605_s5 + $0x8] sm:$0xff] %v375_v59 }
 0x1b9   :  { %v377_v61 = vpop.f32.mrf.mxu1 }
 0x1ba   :  { %385 = vsyncpa [#allocation3], 1 }
 0x1bb   :  { %386 = vsyncpa [#allocation5], 1 }

</bundles_post_ra>
